<compile_context>
chip_gen: v7x
topology: tpu7x:2x2x1
jax: 0.10.0
libtpu: 0.0.40
codegen_flags: <defaults>
</compile_context>

<pallas_src>
import jax
import jax.numpy as jnp
from jax.experimental import pallas as pl
from jax.experimental.pallas import tpu as pltpu


def mlp_kernel(p_ref, x_ref, o_ref):
    """p_ref : SMEM (17,) f32 = [w1[0,0..3], w1[1,0..3], b1[0..3], w2[0..3,0], b2]
       x_ref : VMEM (2, rb, 128) — feature-major, batch tiled (sublane, lane) dense
       o_ref : VMEM (rb, 128)    — dense output tile
    """
    x0 = x_ref[0]                   # (rb, 128)  feature 0 across the batch tile
    x1 = x_ref[1]                   # (rb, 128)  feature 1 across the batch tile

    # fc1 + ReLU + fc2, fully unrolled over the 4 hidden units (pure VPU work;
    # scalar weights broadcast from SMEM).  No MXU.
    z = None
    for j in range(4):
        h_j = jnp.maximum(x0 * p_ref[j] + x1 * p_ref[4 + j] + p_ref[8 + j], 0.0)
        t = h_j * p_ref[12 + j]
        z = t if z is None else z + t
    z = z + p_ref[16]               # + b2

    # sigmoid = 1 / (1 + exp(-z)).  exp -> EUP, approx reciprocal -> EUP.
    # Clamp the exp argument so z << 0 gives a finite large value (recip -> ~0)
    # instead of inf, avoiding any inf/NaN corner case in the approx recip.
    e = jnp.exp(jnp.minimum(-z, 60.0))
    o_ref[...] = pl.reciprocal(1.0 + e, approx=True)


def _mlp_pallas(x, w1, b1, w2, b2, *, block_rows=4096):
    """Pallas path.  x: (B, 2) f32 -> (B, 1) f32."""
    B = x.shape[0]

    # Single packed parameter slab -> one tiny SMEM transfer.
    params = jnp.concatenate(
        [w1.reshape(-1), b1.reshape(-1), w2.reshape(-1), b2.reshape(-1)]
    ).astype(jnp.float32)                                    # (17,)

    # Dense (rows, 128) batch layout.  rb = rows per grid step (multiple of 8).
    rows = pl.cdiv(B, 128)                                   # batch rows of 128
    rb = max(8, (int(block_rows) // 8) * 8)                  # round to sublane tile
    rb = min(rb, 8 * pl.cdiv(rows, 8))                       # don't exceed the batch
    Rp = rb * pl.cdiv(rows, rb)                              # padded row count
    Bp = Rp * 128                                            # padded sample count

    # TODO(synk): keep activations feature-major upstream to skip this pad+transpose.
    x_pad = jnp.zeros((Bp, 2), jnp.float32).at[:B, :].set(x.astype(jnp.float32))
    xT = x_pad.T.reshape(2, Rp, 128)                         # (2, Rp, 128)

    cost = pl.CostEstimate(
        flops=30 * Bp,                 # ~30 VALU ops / sample
        transcendentals=2 * Bp,        # exp + reciprocal / sample
        bytes_accessed=12 * Bp,        # 8 B in + 4 B out / sample
    )

    out = pl.pallas_call(
        mlp_kernel,
        out_shape=jax.ShapeDtypeStruct((Rp, 128), jnp.float32),
        grid=(Rp // rb,),
        in_specs=[
            pl.BlockSpec(memory_space=pltpu.MemorySpace.SMEM),     # packed params
            pl.BlockSpec((2, rb, 128), lambda i: (0, i, 0)),       # dense x block
        ],
        out_specs=pl.BlockSpec((rb, 128), lambda i: (i, 0)),       # dense out block
        compiler_params=pltpu.CompilerParams(
            dimension_semantics=("parallel",)),
        cost_estimate=cost,
    )(params, xT)                                            # (Rp, 128)

    return out.reshape(Bp)[:B].reshape(B, 1)


def reference(x, w1, b1, w2, b2):
    """Fused-XLA forward (also the small-batch fast path)."""
    h = jnp.maximum(x @ w1 + b1, 0.0)
    return jax.nn.sigmoid(h @ w2 + b2)


def privacy_preserving_ai(x, w1, b1, w2, b2, *, block_rows=4096,
                          min_kernel_batch=8192):
    """x: (B, 2); w1: (2, 4); b1: (1, 4); w2: (4, 1); b2: (1, 1) -> (B, 1).

    Below `min_kernel_batch` samples the fixed pallas_call launch/DMA cost
    dominates, so dispatch to the fused XLA expression; above it, use the
    lane+sublane-dense Pallas kernel.
    """
    if x.shape[0] < min_kernel_batch:
        return reference(x.astype(jnp.float32), w1, b1, w2, b2)
    return _mlp_pallas(x, w1, b1, w2, b2, block_rows=block_rows)


def init_params(key):
    """Deterministic init mirroring nn.Linear's U(-1/sqrt(fan_in), 1/sqrt(fan_in))."""
    k1, k2, k3, k4 = jax.random.split(key, 4)
    bound1 = 1.0 / jnp.sqrt(2.0)   # fc1 fan_in = 2
    bound2 = 1.0 / jnp.sqrt(4.0)   # fc2 fan_in = 4
    w1 = jax.random.uniform(k1, (2, 4), jnp.float32, -bound1, bound1)
    b1 = jax.random.uniform(k2, (1, 4), jnp.float32, -bound1, bound1)
    w2 = jax.random.uniform(k3, (4, 1), jnp.float32, -bound2, bound2)
    b2 = jax.random.uniform(k4, (1, 1), jnp.float32, -bound2, bound2)
    return w1, b1, w2, b2


if __name__ == "__main__":
    key = jax.random.PRNGKey(0)
    kx, kp = jax.random.split(key)

    B = 8
    x = jax.random.normal(kx, (B, 2), jnp.float32)
    w1, b1, w2, b2 = init_params(kp)
    ref = reference(x, w1, b1, w2, b2)

    # 1) Default dispatcher: at B=8 this takes the fused-XLA fast path.
    out_small = privacy_preserving_ai(x, w1, b1, w2, b2)
    out_small = jax.block_until_ready(out_small)
    assert out_small.shape == (B, 1)
    assert jnp.allclose(out_small, ref, atol=1e-6, rtol=1e-6), "XLA path mismatch"

    # 2) Force the Pallas kernel path (the large-batch path) on the same data.
    out_kernel = privacy_preserving_ai(x, w1, b1, w2, b2, min_kernel_batch=0)
    out_kernel = jax.block_until_ready(out_kernel)
    assert out_kernel.shape == (B, 1)
    # approx EUP reciprocal in the sigmoid => allow ~1e-3 tolerance
    assert jnp.allclose(out_kernel, ref, atol=1e-3, rtol=1e-3), \
        "Pallas kernel mismatch vs JAX reference"

    print("KERNEL_OK")
</pallas_src>

<mosaic_0001>
module attributes {stable_mosaic.version = 11 : i64} {
  func.func @mlp_kernel(%arg0: i32, %arg1: memref<17xf32, #tpu.memory_space<smem>>, %arg2: memref<2x8x128xf32, #tpu.memory_space<vmem>>, %arg3: memref<8x128xf32, #tpu.memory_space<vmem>>) attributes {dimension_semantics = [#tpu.dimension_semantics<parallel>], iteration_bounds = array<i64: 1>, scalar_prefetch = 0 : i64, scratch_operands = 0 : i64, tpu.core_type = #tpu.core_type<tc>, window_params = [{transform_indices = @transform_0, window_bounds = array<i64: 17>}, {transform_indices = @transform_1, window_bounds = array<i64: 2, 8, 128>}, {transform_indices = @transform_2, window_bounds = array<i64: 8, 128>}]} {
    %c0 = arith.constant 0 : index
    %c0_0 = arith.constant 0 : index
    %c0_1 = arith.constant 0 : index
    %0 = vector.load %arg2[%c0, %c0_0, %c0_1] : memref<2x8x128xf32, #tpu.memory_space<vmem>>, vector<1x8x128xf32>
    %1 = vector.shape_cast %0 : vector<1x8x128xf32> to vector<8x128xf32>
    %c1 = arith.constant 1 : index
    %c0_2 = arith.constant 0 : index
    %c0_3 = arith.constant 0 : index
    %2 = vector.load %arg2[%c1, %c0_2, %c0_3] : memref<2x8x128xf32, #tpu.memory_space<vmem>>, vector<1x8x128xf32>
    %3 = vector.shape_cast %2 : vector<1x8x128xf32> to vector<8x128xf32>
    %c0_4 = arith.constant 0 : index
    %4 = memref.load %arg1[%c0_4] : memref<17xf32, #tpu.memory_space<smem>>
    %5 = vector.broadcast %4 : f32 to vector<8x128xf32>
    %6 = arith.mulf %1, %5 : vector<8x128xf32>
    %c4 = arith.constant 4 : index
    %7 = memref.load %arg1[%c4] : memref<17xf32, #tpu.memory_space<smem>>
    %8 = vector.broadcast %7 : f32 to vector<8x128xf32>
    %9 = arith.mulf %3, %8 : vector<8x128xf32>
    %10 = arith.addf %6, %9 : vector<8x128xf32>
    %c8 = arith.constant 8 : index
    %11 = memref.load %arg1[%c8] : memref<17xf32, #tpu.memory_space<smem>>
    %12 = vector.broadcast %11 : f32 to vector<8x128xf32>
    %13 = arith.addf %10, %12 : vector<8x128xf32>
    %cst = arith.constant 0.000000e+00 : f32
    %14 = vector.broadcast %cst : f32 to vector<8x128xf32>
    %15 = arith.maximumf %13, %14 : vector<8x128xf32>
    %c12 = arith.constant 12 : index
    %16 = memref.load %arg1[%c12] : memref<17xf32, #tpu.memory_space<smem>>
    %17 = vector.broadcast %16 : f32 to vector<8x128xf32>
    %18 = arith.mulf %15, %17 : vector<8x128xf32>
    %c1_5 = arith.constant 1 : index
    %19 = memref.load %arg1[%c1_5] : memref<17xf32, #tpu.memory_space<smem>>
    %20 = vector.broadcast %19 : f32 to vector<8x128xf32>
    %21 = arith.mulf %1, %20 : vector<8x128xf32>
    %c5 = arith.constant 5 : index
    %22 = memref.load %arg1[%c5] : memref<17xf32, #tpu.memory_space<smem>>
    %23 = vector.broadcast %22 : f32 to vector<8x128xf32>
    %24 = arith.mulf %3, %23 : vector<8x128xf32>
    %25 = arith.addf %21, %24 : vector<8x128xf32>
    %c9 = arith.constant 9 : index
    %26 = memref.load %arg1[%c9] : memref<17xf32, #tpu.memory_space<smem>>
    %27 = vector.broadcast %26 : f32 to vector<8x128xf32>
    %28 = arith.addf %25, %27 : vector<8x128xf32>
    %cst_6 = arith.constant 0.000000e+00 : f32
    %29 = vector.broadcast %cst_6 : f32 to vector<8x128xf32>
    %30 = arith.maximumf %28, %29 : vector<8x128xf32>
    %c13 = arith.constant 13 : index
    %31 = memref.load %arg1[%c13] : memref<17xf32, #tpu.memory_space<smem>>
    %32 = vector.broadcast %31 : f32 to vector<8x128xf32>
    %33 = arith.mulf %30, %32 : vector<8x128xf32>
    %34 = arith.addf %18, %33 : vector<8x128xf32>
    %c2 = arith.constant 2 : index
    %35 = memref.load %arg1[%c2] : memref<17xf32, #tpu.memory_space<smem>>
    %36 = vector.broadcast %35 : f32 to vector<8x128xf32>
    %37 = arith.mulf %1, %36 : vector<8x128xf32>
    %c6 = arith.constant 6 : index
    %38 = memref.load %arg1[%c6] : memref<17xf32, #tpu.memory_space<smem>>
    %39 = vector.broadcast %38 : f32 to vector<8x128xf32>
    %40 = arith.mulf %3, %39 : vector<8x128xf32>
    %41 = arith.addf %37, %40 : vector<8x128xf32>
    %c10 = arith.constant 10 : index
    %42 = memref.load %arg1[%c10] : memref<17xf32, #tpu.memory_space<smem>>
    %43 = vector.broadcast %42 : f32 to vector<8x128xf32>
    %44 = arith.addf %41, %43 : vector<8x128xf32>
    %cst_7 = arith.constant 0.000000e+00 : f32
    %45 = vector.broadcast %cst_7 : f32 to vector<8x128xf32>
    %46 = arith.maximumf %44, %45 : vector<8x128xf32>
    %c14 = arith.constant 14 : index
    %47 = memref.load %arg1[%c14] : memref<17xf32, #tpu.memory_space<smem>>
    %48 = vector.broadcast %47 : f32 to vector<8x128xf32>
    %49 = arith.mulf %46, %48 : vector<8x128xf32>
    %50 = arith.addf %34, %49 : vector<8x128xf32>
    %c3 = arith.constant 3 : index
    %51 = memref.load %arg1[%c3] : memref<17xf32, #tpu.memory_space<smem>>
    %52 = vector.broadcast %51 : f32 to vector<8x128xf32>
    %53 = arith.mulf %1, %52 : vector<8x128xf32>
    %c7 = arith.constant 7 : index
    %54 = memref.load %arg1[%c7] : memref<17xf32, #tpu.memory_space<smem>>
    %55 = vector.broadcast %54 : f32 to vector<8x128xf32>
    %56 = arith.mulf %3, %55 : vector<8x128xf32>
    %57 = arith.addf %53, %56 : vector<8x128xf32>
    %c11 = arith.constant 11 : index
    %58 = memref.load %arg1[%c11] : memref<17xf32, #tpu.memory_space<smem>>
    %59 = vector.broadcast %58 : f32 to vector<8x128xf32>
    %60 = arith.addf %57, %59 : vector<8x128xf32>
    %cst_8 = arith.constant 0.000000e+00 : f32
    %61 = vector.broadcast %cst_8 : f32 to vector<8x128xf32>
    %62 = arith.maximumf %60, %61 : vector<8x128xf32>
    %c15 = arith.constant 15 : index
    %63 = memref.load %arg1[%c15] : memref<17xf32, #tpu.memory_space<smem>>
    %64 = vector.broadcast %63 : f32 to vector<8x128xf32>
    %65 = arith.mulf %62, %64 : vector<8x128xf32>
    %66 = arith.addf %50, %65 : vector<8x128xf32>
    %c16 = arith.constant 16 : index
    %67 = memref.load %arg1[%c16] : memref<17xf32, #tpu.memory_space<smem>>
    %68 = vector.broadcast %67 : f32 to vector<8x128xf32>
    %69 = arith.addf %66, %68 : vector<8x128xf32>
    %cst_9 = arith.constant 0.000000e+00 : f32
    %70 = vector.broadcast %cst_9 : f32 to vector<8x128xf32>
    %71 = arith.subf %70, %69 : vector<8x128xf32>
    %cst_10 = arith.constant 6.000000e+01 : f32
    %72 = vector.broadcast %cst_10 : f32 to vector<8x128xf32>
    %73 = arith.minimumf %71, %72 : vector<8x128xf32>
    %74 = math.exp %73 : vector<8x128xf32>
    %cst_11 = arith.constant 1.000000e+00 : f32
    %75 = vector.broadcast %cst_11 : f32 to vector<8x128xf32>
    %76 = arith.addf %75, %74 : vector<8x128xf32>
    %77 = tpu.reciprocal %76 {approx = true} : vector<8x128xf32> -> vector<8x128xf32>
    %c0_12 = arith.constant 0 : index
    %c0_13 = arith.constant 0 : index
    %78 = vector.load %arg3[%c0_12, %c0_13] : memref<8x128xf32, #tpu.memory_space<vmem>>, vector<8x128xf32>
    tpu.vector_store %arg3[%c0_12, %c0_13], %77 {strides = array<i32>} : memref<8x128xf32, #tpu.memory_space<vmem>>, vector<8x128xf32>,
    return
  }
  func.func @transform_0(%arg0: i32) -> i32 {
    %c0_i32 = arith.constant 0 : i32
    %c0_i32_0 = arith.constant 0 : i32
    return %c0_i32 : i32
  }
  func.func @transform_1(%arg0: i32) -> (i32, i32, i32) {
    %c0_i32 = arith.constant 0 : i32
    %c0_i32_0 = arith.constant 0 : i32
    %c0_i32_1 = arith.constant 0 : i32
    return %c0_i32, %arg0, %c0_i32_0 : i32, i32, i32
  }
  func.func @transform_2(%arg0: i32) -> (i32, i32) {
    %c0_i32 = arith.constant 0 : i32
    %c0_i32_0 = arith.constant 0 : i32
    return %arg0, %c0_i32 : i32, i32
  }
}

</mosaic_0001>

<bundles_post_ra>
// kernel: tpu_custom_call.1
= control target key start
LH: loop header
LB: loop body
LE: loop exit
PB: predicated region body
PF: predicated region fallthrough
CT: control target
= control target key end

     0   :  { %7 = vsyncpa [#allocation5], 0  ;;  %s284_s0 = inlined_call_operand.hbm [shape: f32[17], index: 0, kind: input, shape index: {}]   ;;  %s285_s1 = inlined_call_operand.hbm [shape: f32[2,8,128], index: 1, kind: input, shape index: {}]   ;;  %s286_s2 = inlined_call_operand.hbm [shape: f32[8,128], index: 2, kind: output, shape index: {}]  }
   0x1   :  { %8 = vsyncpa [#allocation3], 0 }
   0x2   :  { %9 = vsyncpa [#allocation4], 0  ;;  %s150_s11 = scalar_lea.hbm %s284_s0, 16 }
   0x3   :  { %p151_p0 = scmp.ne.s32.totalorder %s284_s0, %s150_s11  ;;  %p154_p1 = scmp.lt.u32.totalorder %s150_s11, %s284_s0 }
   0x5   :  { %p156_p2 = pnand %p154_p1, %p151_p0 }
   0x7   :  { %159 = shalt.err (!%p156_p2)
}
   0x8   :  { %s210_s16 = smov [#allocation2]   ;;  %s211_s19 = smov [#allocation6]  }
   0x9   :  { %17 = dma.hbm_to_smem %s284_s0, 16, %s210_s16, [#allocation5]  }
   0xa   :  { %s23_s20 = sshll.u32 %s211_s19, 4  ;;  %s160_s23 = scalar_lea.hbm %s285_s1, 256  ;;  %s24_s20 = int_to_ptr.vmem [resolvable:$true] %s23_s20 }
   0xb   :  { %p161_p3 = scmp.ne.s32.totalorder %s285_s1, %s160_s23  ;;  %p164_p4 = scmp.lt.u32.totalorder %s160_s23, %s285_s1 }
   0xd   :  { %p166_p5 = pnand %p164_p4, %p161_p3 }
   0xf   :  { %169 = shalt.err (!%p166_p5)
}
  0x10   :  { %s170_s28 = scalar_lea.vmem %s24_s20, 256  ;;  %p175_p7 = scmp.lt.s32.totalorder %s24_s20, %s24_s20 }
  0x11   :  { %p171_p6 = scmp.ne.s32.totalorder %s24_s20, %s170_s28  ;;  %p176_p8 = scmp.lt.s32.totalorder %s170_s28, %s170_s28 }
  0x13   :  { %p177_p9 = por %p176_p8, %p175_p7 }
  0x15   :  { %p178_p10 = pnand %p177_p9, %p171_p6 }
  0x17   :  { %181 = shalt.err (!%p178_p10)
}
  0x18   :  { %s212_s0 = smov 128   ;;  %s213_s29 = smov 8  }
  0x19   :  { %29 = dma.hbm_to_vmem [thread:$0]  %s285_s1, 256, %s24_s20, [#allocation3], %s212_s0, %s212_s0, %s213_s29  }
  0x1a   :  { %204 = dma.done.wait [#allocation5], 16  }
  0x1b   :  { %205 = vsyncadd [#allocation5], 4294967280 }
  0x1c   :  { %206 = dma.done.wait [#allocation3], 256  }
  0x1d   :  { %207 = vsyncadd [#allocation3], 4294967040 }
  0x1e   :  { %36 = sfence }
  0x1f   :  { %s40_s4 = sld [smem:[#allocation2]]  ;;  %s125_s5 = sld [smem:[#allocation2 + $0x4]]  ;;  %v37_v0 = vld [vmem:[#allocation6] sm:$0xff]  ;;  %v39_v1 = vld [vmem:[#allocation6 + $0x8] sm:$0xff] }
  0x20   :  { %s126_s6 = sld [smem:[#allocation2 + $0x8]]  ;;  %s128_s7 = sld [smem:[#allocation2 + $0x1]] }
  0x21   :  { %s129_s8 = sld [smem:[#allocation2 + $0x5]]  ;;  %s254_s9 = sld [smem:[#allocation2 + $0xc]] }
  0x22   :  { %s256_s10 = sld [smem:[#allocation2 + $0x9]]  ;;  %s132_s11 = sld [smem:[#allocation2 + $0x2]] }
  0x23   :  { %s133_s12 = sld [smem:[#allocation2 + $0x6]]  ;;  %s258_s13 = sld [smem:[#allocation2 + $0xd]] }
  0x24   :  { %s260_s1 = sld [smem:[#allocation2 + $0xa]]  ;;  %s136_s14 = sld [smem:[#allocation2 + $0x3]] }
  0x25   :  { %v41_v2 = vstv %s40_s4  ;;  %v44_v3 = vstv %s125_s5  ;;  %s137_s15 = sld [smem:[#allocation2 + $0x7]]  ;;  %s262_s16 = sld [smem:[#allocation2 + $0xb]] }
  0x26   :  { %v42_v4 = vmul.f32 %v41_v2, %v37_v0  ;;  %v45_v5 = vmul.f32 %v44_v3, %v39_v1  ;;  %v48_v6 = vstv %s126_s6  ;;  %v55_v7 = vstv %s128_s7  ;;  %s264_s17 = sld [smem:[#allocation2 + $0xe]]  ;;  %s139_s18 = sld [smem:[#allocation2 + $0xf]] }
  0x27   :  { %v58_v8 = vstv %s129_s8  ;;  %v56_v10 = vmul.f32 %v55_v7, %v37_v0  ;;  %v52_v19 = vstv %s254_s9  ;;  %s140_s19 = sld [smem:[#allocation2 + $0x10]]  ;;  %s214_s20 = smov [#allocation7]  }
  0x28   :  { %v46_v9 = vadd.f32 %v45_v5, %v42_v4  ;;  %v59_v11 = vmul.f32 %v58_v8, %v39_v1  ;;  %v62_v12 = vstv %s256_s10  ;;  %v70_v13 = vstv %s132_s11  ;;  %s115_s21 = sshll.u32 %s214_s20, 4  ;;  %s116_s21 = int_to_ptr.vmem [resolvable:$true] %s115_s21 }
  0x29   :  { %v73_v14 = vstv %s133_s12  ;;  %v71_v17 = vmul.f32 %v70_v13, %v37_v0  ;;  %v66_v27 = vstv %s258_s13  ;;  %s182_s22 = scalar_lea.vmem %s116_s21, 128  ;;  %p187_p12 = scmp.lt.s32.totalorder %s116_s21, %s116_s21 }
  0x2a   :  { %v49_v15 = vadd.f32 %v48_v6, %v46_v9  ;;  %v60_v16 = vadd.f32 %v59_v11, %v56_v10  ;;  %v74_v18 = vmul.f32 %v73_v14, %v39_v1  ;;  %v77_v20 = vstv %s260_s1  ;;  %p183_p11 = scmp.ne.s32.totalorder %s116_s21, %s182_s22  ;;  %p188_p13 = scmp.lt.s32.totalorder %s182_s22, %s182_s22 }
  0x2b   :  { %v85_v21 = vstv %s136_s14  ;;  %v88_v22 = vstv %s137_s15  ;;  %v92_v32 = vstv %s262_s16 }
  0x2c   :  { %v50_v23 = vmax.f32 %v49_v15, 0.0  ;;  %v63_v24 = vadd.f32 %v62_v12, %v60_v16  ;;  %v75_v25 = vadd.f32 %v74_v18, %v71_v17  ;;  %v86_v26 = vmul.f32 %v85_v21, %v37_v0  ;;  %p189_p0 = por %p188_p13, %p187_p12 }
  0x2d   :  { %v89_v28 = vmul.f32 %v88_v22, %v39_v1  ;;  %v81_v33 = vstv %s264_s17  ;;  %v96_v40 = vstv %s139_s18  ;;  %v100_v44 = vstv %s140_s19 }
  0x2e   :  { %v53_v29 = vmul.f32 %v52_v19, %v50_v23  ;;  %v64_v30 = vmax.f32 %v63_v24, 0.0  ;;  %v78_v31 = vadd.f32 %v77_v20, %v75_v25  ;;  %p190_p1 = pnand %p189_p0, %p183_p11 }
  0x2f   :  { %v90_v34 = vadd.f32 %v89_v28, %v86_v26 }
  0x30   :  { %v67_v35 = vmul.f32 %v66_v27, %v64_v30  ;;  %v79_v36 = vmax.f32 %v78_v31, 0.0 }
  0x31   :  { %v93_v37 = vadd.f32 %v92_v32, %v90_v34 }
  0x32   :  { %v68_v38 = vadd.f32 %v67_v35, %v53_v29  ;;  %v82_v39 = vmul.f32 %v81_v33, %v79_v36 }
  0x33   :  { %v94_v41 = vmax.f32 %v93_v37, 0.0 }
  0x34   :  { %v83_v42 = vadd.f32 %v82_v39, %v68_v38 }
  0x35   :  { %v97_v43 = vmul.f32 %v96_v40, %v94_v41 }
  0x37   :  { %v98_v45 = vadd.f32 %v97_v43, %v83_v42 }
  0x39   :  { %v101_v46 = vadd.f32 %v100_v44, %v98_v45 }
  0x3b   :  { %v102_v47 = vsub.f32 0.0, %v101_v46 }
  0x3d   :  { %v103_v48 = vmin.f32 %v102_v47, 60.0 }
  0x3f   :  { %v104_v49 = vmul.f32 1.442695, %v103_v48 }
  0x41   :  { %146 = vpow2.f32 %v104_v49 }
  0x4b   :  { %v147_v50 = vpop.eup %146 }
  0x4c   :  { %v106_v51 = vadd.f32 1.0, %v147_v50 }
  0x4e   :  { %148 = vrcp.f32 %v106_v51 }
  0x58   :  { %v149_v52 = vpop.eup %148 }
  0x59   :  { %108 = vst [vmem:[#allocation7] sm:$0xff] %v149_v52 }
  0x5a   :  { %193 = shalt.err (!%p190_p1)
}
  0x5b   :  { %s194_s25 = scalar_lea.hbm %s286_s2, 128 }
  0x5c   :  { %p195_p2 = scmp.ne.s32.totalorder %s286_s2, %s194_s25  ;;  %p198_p3 = scmp.lt.u32.totalorder %s194_s25, %s286_s2 }
  0x5e   :  { %p200_p4 = pnand %p198_p3, %p195_p2 }
  0x60   :  { %203 = shalt.err (!%p200_p4)
}
  0x61   :  { %118 = dma.vmem_to_hbm [thread:$0]  %s116_s21, 128, %s286_s2, [#allocation4]  }
  0x62   :  { %208 = dma.done.wait [#allocation4], 128  }
  0x63   :  { %209 = vsyncadd [#allocation4], 4294967168 }
  0x64   :  { %122 = vsyncpa [#allocation3], 1 }
  0x65   :  { %123 = vsyncpa [#allocation4], 1 }
  0x66   :  { %124 = vsyncpa [#allocation5], 1 }

</bundles_post_ra>
